<compile_context>
chip_gen: v5e
topology: v5e:2x2
jax: 0.10.0
libtpu: 0.0.40
codegen_flags: <defaults>
</compile_context>

<pallas_src>
import jax
import jax.numpy as jnp
from jax.experimental import pallas as pl
from jax.experimental.pallas import tpu as pltpu

_LANES = 512        # lane-dense last dim (multiple of 128 -> unmasked stores)
_TILE_R_MAX = 512   # max sublane rows per tile: (512, 512) f32 = 1 MiB / field


def _round_up(x, m):
    return ((x + m - 1) // m) * m


def _ihd_kernel(coef_ref, i_ref, h_ref, o_ref):
    # coef_ref: SMEM f32[4] = [cI, cH, nu, l]   (cI = b - g - nu, cH = -(g + l))
    # i_ref, h_ref: VMEM f32[TILE_R, LANES]
    # o_ref:        VMEM f32[3, TILE_R, LANES]  (rows: dI, dH, dD)
    cI = coef_ref[0]
    cH = coef_ref[1]
    nu = coef_ref[2]
    l = coef_ref[3]

    I = i_ref[...]
    H = h_ref[...]

    o_ref[0] = cI * I            # dI = (b - g - nu) * I
    o_ref[1] = nu * I + cH * H   # dH = nu*I - (g + l)*H
    o_ref[2] = l * H             # dD = l*H


def ihd_fit_time_forward(t, y, parms, time):
    """t: scalar, y: f32[N, 3], parms: f32[5] = [b1,b2,g,nu,l], time: scalar -> f32[3*N]."""
    y = jnp.asarray(y, jnp.float32)
    n = y.shape[0]

    p = jnp.asarray(parms, jnp.float32).reshape(5)
    b1, b2, g, nu, l = p[0], p[1], p[2], p[3], p[4]
    t = jnp.asarray(t, jnp.float32)
    time = jnp.asarray(time, jnp.float32)

    # Scalar-side work: one sigmoid total (not N), coefficients folded.
    b = b1 + b2 * jax.nn.sigmoid(t - time)
    coef = jnp.stack([b - g - nu, -(g + l), nu, l]).astype(jnp.float32)

    # Sublane/lane-dense layout: each field -> (R, _LANES), R = num_tiles * tile_r.
    r_needed = pl.cdiv(n, _LANES)
    num_tiles = pl.cdiv(r_needed, _TILE_R_MAX)
    tile_r = _round_up(pl.cdiv(r_needed, num_tiles), 8)
    r = tile_r * num_tiles
    n_pad = r * _LANES
    pad = n_pad - n

    # D column (y[:, 2]) is intentionally not loaded.
    i2d = jnp.pad(y[:, 0], (0, pad)).reshape(r, _LANES)
    h2d = jnp.pad(y[:, 1], (0, pad)).reshape(r, _LANES)

    out = pl.pallas_call(
        _ihd_kernel,
        out_shape=jax.ShapeDtypeStruct((3, r, _LANES), jnp.float32),
        grid=(num_tiles,),
        in_specs=[
            pl.BlockSpec(memory_space=pltpu.MemorySpace.SMEM),     # coef scalars
            pl.BlockSpec((tile_r, _LANES), lambda i: (i, 0)),      # I tile
            pl.BlockSpec((tile_r, _LANES), lambda i: (i, 0)),      # H tile
        ],
        out_specs=pl.BlockSpec((3, tile_r, _LANES), lambda i: (0, i, 0)),
        compiler_params=pltpu.CompilerParams(
            dimension_semantics=("parallel",),
            vmem_limit_bytes=32 * 1024 * 1024,
        ),
    )(coef, i2d, h2d)

    # Row-major flatten of (3, N) == torch.cat((dI, dH, dD), 0).
    flat = out.reshape(3, n_pad)
    if n_pad != n:
        flat = flat[:, :n]
    return flat.reshape(-1)


def _reference(t, y, parms, time):
    y = jnp.asarray(y, jnp.float32)
    p = jnp.asarray(parms, jnp.float32)
    b1, b2, g, nu, l = p[0], p[1], p[2], p[3], p[4]
    b = b1 + b2 * jax.nn.sigmoid(
        jnp.asarray(t, jnp.float32) - jnp.asarray(time, jnp.float32))
    I, H = y[:, 0], y[:, 1]
    dI = b * I - g * I - nu * I
    dH = nu * I - g * H - l * H
    dD = l * H
    return jnp.concatenate([dI, dH, dD], axis=0)


if __name__ == "__main__":
    key = jax.random.PRNGKey(0)

    # Deterministic parameters (5 scalar parms + time, as in __init__).
    parms = jnp.array([0.30, 0.20, 0.10, 0.05, 0.02], dtype=jnp.float32)
    time = jnp.float32(5.0)
    t = jnp.float32(3.5)

    # Small case matching the module's expected input: N=8 samples of (I, H, D).
    y_small = jax.random.uniform(key, (8, 3), dtype=jnp.float32)
    out_small = jax.block_until_ready(ihd_fit_time_forward(t, y_small, parms, time))
    ref_small = _reference(t, y_small, parms, time)
    assert out_small.shape == (3 * 8,)
    assert jnp.allclose(out_small, ref_small, atol=1e-5, rtol=1e-5)

    # Larger case to exercise the multi-tile grid + padded tail path.
    y_big = jax.random.uniform(jax.random.PRNGKey(1), (300_000, 3), dtype=jnp.float32)
    out_big = jax.block_until_ready(ihd_fit_time_forward(t, y_big, parms, time))
    ref_big = _reference(t, y_big, parms, time)
    assert out_big.shape == (3 * 300_000,)
    assert jnp.allclose(out_big, ref_big, atol=1e-5, rtol=1e-5)

    print("KERNEL_OK")
</pallas_src>

<mosaic_0001>
module attributes {stable_mosaic.version = 11 : i64} {
  func.func @_ihd_kernel(%arg0: i32, %arg1: memref<4xf32, #tpu.memory_space<smem>>, %arg2: memref<8x512xf32, #tpu.memory_space<vmem>>, %arg3: memref<8x512xf32, #tpu.memory_space<vmem>>, %arg4: memref<3x8x512xf32, #tpu.memory_space<vmem>>) attributes {dimension_semantics = [#tpu.dimension_semantics<parallel>], iteration_bounds = array<i64: 1>, scalar_prefetch = 0 : i64, scratch_operands = 0 : i64, tpu.core_type = #tpu.core_type<tc>, window_params = [{transform_indices = @transform_0, window_bounds = array<i64: 4>}, {transform_indices = @transform_1, window_bounds = array<i64: 8, 512>}, {transform_indices = @transform_2, window_bounds = array<i64: 8, 512>}, {transform_indices = @transform_3, window_bounds = array<i64: 3, 8, 512>}]} {
    %c0 = arith.constant 0 : index
    %0 = memref.load %arg1[%c0] : memref<4xf32, #tpu.memory_space<smem>>
    %c1 = arith.constant 1 : index
    %1 = memref.load %arg1[%c1] : memref<4xf32, #tpu.memory_space<smem>>
    %c2 = arith.constant 2 : index
    %2 = memref.load %arg1[%c2] : memref<4xf32, #tpu.memory_space<smem>>
    %c3 = arith.constant 3 : index
    %3 = memref.load %arg1[%c3] : memref<4xf32, #tpu.memory_space<smem>>
    %c0_0 = arith.constant 0 : index
    %c0_1 = arith.constant 0 : index
    %4 = vector.load %arg2[%c0_0, %c0_1] : memref<8x512xf32, #tpu.memory_space<vmem>>, vector<8x512xf32>
    %c0_2 = arith.constant 0 : index
    %c0_3 = arith.constant 0 : index
    %5 = vector.load %arg3[%c0_2, %c0_3] : memref<8x512xf32, #tpu.memory_space<vmem>>, vector<8x512xf32>
    %6 = vector.broadcast %0 : f32 to vector<8x512xf32>
    %7 = arith.mulf %6, %4 : vector<8x512xf32>
    %c0_4 = arith.constant 0 : index
    %c0_5 = arith.constant 0 : index
    %c0_6 = arith.constant 0 : index
    %8 = vector.load %arg4[%c0_4, %c0_5, %c0_6] : memref<3x8x512xf32, #tpu.memory_space<vmem>>, vector<1x8x512xf32>
    %9 = vector.shape_cast %8 : vector<1x8x512xf32> to vector<8x512xf32>
    %10 = vector.shape_cast %7 : vector<8x512xf32> to vector<1x8x512xf32>
    tpu.vector_store %arg4[%c0_4, %c0_5, %c0_6], %10 {strides = array<i32>} : memref<3x8x512xf32, #tpu.memory_space<vmem>>, vector<1x8x512xf32>,
    %11 = vector.broadcast %2 : f32 to vector<8x512xf32>
    %12 = arith.mulf %11, %4 : vector<8x512xf32>
    %13 = vector.broadcast %1 : f32 to vector<8x512xf32>
    %14 = arith.mulf %13, %5 : vector<8x512xf32>
    %15 = arith.addf %12, %14 : vector<8x512xf32>
    %c1_7 = arith.constant 1 : index
    %c0_8 = arith.constant 0 : index
    %c0_9 = arith.constant 0 : index
    %16 = vector.load %arg4[%c1_7, %c0_8, %c0_9] : memref<3x8x512xf32, #tpu.memory_space<vmem>>, vector<1x8x512xf32>
    %17 = vector.shape_cast %16 : vector<1x8x512xf32> to vector<8x512xf32>
    %18 = vector.shape_cast %15 : vector<8x512xf32> to vector<1x8x512xf32>
    tpu.vector_store %arg4[%c1_7, %c0_8, %c0_9], %18 {strides = array<i32>} : memref<3x8x512xf32, #tpu.memory_space<vmem>>, vector<1x8x512xf32>,
    %19 = vector.broadcast %3 : f32 to vector<8x512xf32>
    %20 = arith.mulf %19, %5 : vector<8x512xf32>
    %c2_10 = arith.constant 2 : index
    %c0_11 = arith.constant 0 : index
    %c0_12 = arith.constant 0 : index
    %21 = vector.load %arg4[%c2_10, %c0_11, %c0_12] : memref<3x8x512xf32, #tpu.memory_space<vmem>>, vector<1x8x512xf32>
    %22 = vector.shape_cast %21 : vector<1x8x512xf32> to vector<8x512xf32>
    %23 = vector.shape_cast %20 : vector<8x512xf32> to vector<1x8x512xf32>
    tpu.vector_store %arg4[%c2_10, %c0_11, %c0_12], %23 {strides = array<i32>} : memref<3x8x512xf32, #tpu.memory_space<vmem>>, vector<1x8x512xf32>,
    return
  }
  func.func @transform_0(%arg0: i32) -> i32 {
    %c0_i32 = arith.constant 0 : i32
    %c0_i32_0 = arith.constant 0 : i32
    return %c0_i32 : i32
  }
  func.func @transform_1(%arg0: i32) -> (i32, i32) {
    %c0_i32 = arith.constant 0 : i32
    %c0_i32_0 = arith.constant 0 : i32
    return %arg0, %c0_i32 : i32, i32
  }
  func.func @transform_2(%arg0: i32) -> (i32, i32) {
    %c0_i32 = arith.constant 0 : i32
    %c0_i32_0 = arith.constant 0 : i32
    return %arg0, %c0_i32 : i32, i32
  }
  func.func @transform_3(%arg0: i32) -> (i32, i32, i32) {
    %c0_i32 = arith.constant 0 : i32
    %c0_i32_0 = arith.constant 0 : i32
    %c0_i32_1 = arith.constant 0 : i32
    return %c0_i32, %arg0, %c0_i32_0 : i32, i32, i32
  }
}

</mosaic_0001>

<bundles_post_ra>
// kernel: tpu_custom_call.1
= control target key start
LH: loop header
LB: loop body
LE: loop exit
PB: predicated region body
PF: predicated region fallthrough
CT: control target
= control target key end

     0   :  { %8 = vsyncpa [#allocation5], 0  ;;  %s266_s0 = inlined_call_operand.hbm [shape: f32[4], index: 0, kind: input, shape index: {}]   ;;  %s267_s1 = inlined_call_operand.hbm [shape: f32[8,512], index: 1, kind: input, shape index: {}]   ;;  %s268_s2 = inlined_call_operand.hbm [shape: f32[8,512], index: 2, kind: input, shape index: {}]   ;;  %s269_s3 = inlined_call_operand.hbm [shape: f32[3,8,512], index: 3, kind: output, shape index: {}]  }
   0x1   :  { %9 = vsyncpa [#allocation3], 0 }
   0x2   :  { %10 = vsyncpa [#allocation8], 0 }
   0x3   :  { %11 = vsyncpa [#allocation4], 0  ;;  %s17_s14 = sshll.u32 %s266_s0, 4  ;;  %s26_s17 = sshll.u32 %s267_s1, 4  ;;  %s18_s14 = int_to_ptr.hbm [resolvable:$true] %s17_s14  ;;  %s27_s17 = int_to_ptr.hbm [resolvable:$true] %s26_s17 }
   0x4   :  { %s228_s18 = smov [#allocation2]   ;;  %s229_s19 = smov [#allocation6]  }
   0x5   :  { %20 = dma.hbm_to_smem %s18_s14, 16, %s228_s18, [#allocation5]  }
   0x6   :  { %s28_s20 = sshll.u32 %s229_s19, 4  ;;  %s37_s23 = sshll.u32 %s268_s2, 4  ;;  %s29_s20 = int_to_ptr.vmem [resolvable:$true] %s28_s20  ;;  %s38_s23 = int_to_ptr.hbm [resolvable:$true] %s37_s23 }
   0x7   :  { %31 = dma.hbm_to_vmem [thread:$0]  %s27_s17, 512, %s29_s20, [#allocation3]  }
   0x8   :  { %s230_s24 = smov [#allocation7]  }
   0x9   :  { %s39_s25 = sshll.u32 %s230_s24, 4  ;;  %s40_s25 = int_to_ptr.vmem [resolvable:$true] %s39_s25 }
   0xa   :  { %42 = dma.hbm_to_vmem [thread:$0]  %s38_s23, 512, %s40_s25, [#allocation8]  }
   0xb   :  { %220 = dma.done.wait [#allocation5], 16  }
   0xc   :  { %221 = vsyncadd [#allocation5], 4294967280 }
   0xd   :  { %222 = dma.done.wait [#allocation3], 512  }
   0xe   :  { %223 = vsyncadd [#allocation3], 4294966784 }
   0xf   :  { %224 = dma.done.wait [#allocation8], 512  }
  0x10   :  { %225 = vsyncadd [#allocation8], 4294966784 }
  0x11   :  { %55 = sfence }
  0x12   :  { %s56_s0 = sld [smem:[#allocation2]]  ;;  %v60_v0 = vld [vmem:[#allocation6] sm:$0xff]  ;;  %v61_v1 = vld [vmem:[#allocation6 + $0x8] sm:$0xff]  ;;  %v62_v3 = vld [vmem:[#allocation6 + $0x10] sm:$0xff]  ;;  %s231_s2 = smov [#allocation9]  }
  0x13   :  { %s127_s1 = sld [smem:[#allocation2 + $0x1]]  ;;  %v64_v4 = vld [vmem:[#allocation7] sm:$0xff]  ;;  %v65_v5 = vld [vmem:[#allocation7 + $0x8] sm:$0xff]  ;;  %v63_v9 = vld [vmem:[#allocation6 + $0x18] sm:$0xff]  ;;  %s110_s28 = sshll.u32 %s231_s2, 4  ;;  %s111_s28 = int_to_ptr.vmem [resolvable:$true] %s110_s28 }
  0x14   :  { %s128_s26 = sld [smem:[#allocation2 + $0x2]]  ;;  %v66_v10 = vld [vmem:[#allocation7 + $0x10] sm:$0xff]  ;;  %v67_v11 = vld [vmem:[#allocation7 + $0x18] sm:$0xff]  ;;  %s112_s4 = sshll.u32 %s269_s3, 4  ;;  %s113_s4 = int_to_ptr.hbm [resolvable:$true] %s112_s4 }
  0x15   :  { %s129_s27 = sld [smem:[#allocation2 + $0x3]]  ;;  %s232_s5 = smov 512  }
  0x16   :  { %s233_s6 = smov 32  }
  0x18   :  { %v68_v2 = vstv %s56_s0 }
  0x19   :  { %v69_v6 = vmul.f32 %v68_v2, %v60_v0  ;;  %v70_v7 = vmul.f32 %v68_v2, %v61_v1  ;;  %v71_v8 = vmul.f32 %v68_v2, %v62_v3  ;;  %v72_v12 = vmul.f32 %v68_v2, %v63_v9 }
  0x1a   :  { %v77_v13 = vstv %s128_s26  ;;  %v82_v14 = vstv %s127_s1 }
  0x1b   :  { %73 = vst [vmem:[#allocation9] sm:$0xff] %v69_v6  ;;  %v78_v15 = vmul.f32 %v77_v13, %v60_v0  ;;  %v83_v16 = vmul.f32 %v82_v14, %v64_v4  ;;  %v79_v17 = vmul.f32 %v77_v13, %v61_v1  ;;  %v84_v18 = vmul.f32 %v82_v14, %v65_v5 }
  0x1c   :  { %74 = vst [vmem:[#allocation9 + $0x8] sm:$0xff] %v70_v7  ;;  %v80_v19 = vmul.f32 %v77_v13, %v62_v3  ;;  %v85_v20 = vmul.f32 %v82_v14, %v66_v10  ;;  %v81_v21 = vmul.f32 %v77_v13, %v63_v9  ;;  %v86_v22 = vmul.f32 %v82_v14, %v67_v11 }
  0x1d   :  { %75 = vst [vmem:[#allocation9 + $0x10] sm:$0xff] %v71_v8  ;;  %v87_v23 = vadd.f32 %v83_v16, %v78_v15  ;;  %v88_v24 = vadd.f32 %v84_v18, %v79_v17  ;;  %v96_v25 = vstv %s129_s27 }
  0x1e   :  { %76 = vst [vmem:[#allocation9 + $0x18] sm:$0xff] %v72_v12  ;;  %v89_v26 = vadd.f32 %v85_v20, %v80_v19  ;;  %v90_v27 = vadd.f32 %v86_v22, %v81_v21  ;;  %v97_v28 = vmul.f32 %v96_v25, %v64_v4  ;;  %v98_v29 = vmul.f32 %v96_v25, %v65_v5 }
  0x1f   :  { %92 = vst [vmem:[#allocation9 + $0x20] sm:$0xff] %v87_v23  ;;  %v99_v30 = vmul.f32 %v96_v25, %v66_v10  ;;  %v100_v31 = vmul.f32 %v96_v25, %v67_v11 }
  0x20   :  { %93 = vst [vmem:[#allocation9 + $0x28] sm:$0xff] %v88_v24 }
  0x21   :  { %94 = vst [vmem:[#allocation9 + $0x30] sm:$0xff] %v89_v26 }
  0x22   :  { %95 = vst [vmem:[#allocation9 + $0x38] sm:$0xff] %v90_v27 }
  0x23   :  { %102 = vst [vmem:[#allocation9 + $0x40] sm:$0xff] %v97_v28 }
  0x24   :  { %103 = vst [vmem:[#allocation9 + $0x48] sm:$0xff] %v98_v29 }
  0x25   :  { %104 = vst [vmem:[#allocation9 + $0x50] sm:$0xff] %v99_v30 }
  0x26   :  { %105 = vst [vmem:[#allocation9 + $0x58] sm:$0xff] %v100_v31 }
  0x27   :  { %118 = dma.vmem_to_hbm [thread:$0]  %s111_s28, 1536, %s113_s4, [#allocation4], %s232_s5, %s232_s5, %s233_s6  }
  0x28   :  { %226 = dma.done.wait [#allocation4], 1536  }
  0x29   :  { %227 = vsyncadd [#allocation4], 4294965760 }
  0x2a   :  { %123 = vsyncpa [#allocation3], 1 }
  0x2b   :  { %124 = vsyncpa [#allocation8], 1 }
  0x2c   :  { %125 = vsyncpa [#allocation4], 1 }
  0x2d   :  { %126 = vsyncpa [#allocation5], 1 }

</bundles_post_ra>
